<compile_context>
chip_gen: v7x
topology: tpu7x:2x2x1
jax: 0.10.0
libtpu: 0.0.40
codegen_flags: <defaults>
</compile_context>

<pallas_src>
import jax
import jax.numpy as jnp
from jax import lax
from jax.experimental import pallas as pl
from jax.experimental.pallas import tpu as pltpu


def _round_up(x, m):
    return ((x + m - 1) // m) * m


def mlp_kernel(x_ref, w1_ref, b1_ref, w2_ref, b2_ref, w3_ref, b3_ref, o_ref):
    # x arrives as f32; cast to bf16 in-kernel (free under the DMA pipeline).
    x = x_ref[...].astype(jnp.bfloat16)                                # (TB, D)
    h1 = jnp.dot(x, w1_ref[...], preferred_element_type=jnp.float32) + b1_ref[...]
    h1 = jnp.maximum(h1, 0.0).astype(jnp.bfloat16)                     # (TB, 128)
    # TODO(synk): nn.Dropout is identity in eval mode; training-mode masking not implemented.
    h2 = jnp.dot(h1, w2_ref[...], preferred_element_type=jnp.float32) + b2_ref[...]
    h2 = jnp.maximum(h2, 0.0).astype(jnp.bfloat16)                     # (TB, 128)
    # Final layer computed transposed: (out_dim, TB) result -> lane-dense store.
    out_t = lax.dot_general(
        w3_ref[...], h2,
        dimension_numbers=(((0,), (1,)), ((), ())),
        preferred_element_type=jnp.float32)                            # (out_dim, TB)
    o_ref[...] = (out_t + b3_ref[...]).astype(o_ref.dtype)


def _choose_tile(b, tile_b):
    # The output block's last (lane) dim is the batch tile, so the tile must be
    # a multiple of 128 unless the whole batch fits in a single block.
    if b <= 128:
        return b                      # single full-array block
    if b <= 256:
        return 128                    # >= 2 grid steps keeps both v7x TCs busy
    return max(128, min(tile_b, _round_up(pl.cdiv(b, 2), 128)))


def neural_network_forward(x, kernel_params, tile_b=1024):
    """x: (batch, ...) -- flattened like nn.Flatten(). Returns (batch, output_dim) f32."""
    b = x.shape[0]
    x2d = x.reshape(b, -1)                                   # Flatten; stays float32
    input_dim = x2d.shape[1]
    w1, b1, w2, b2, w3, b3 = kernel_params                   # w*: bf16 padded, b*: f32
    out_dim = w3.shape[1]
    h1p, h2p = w1.shape[1], w2.shape[1]

    tile_b = max(128, (tile_b // 128) * 128)
    tile = _choose_tile(b, tile_b)
    grid = (pl.cdiv(b, tile),)                               # ragged tail handled by Pallas

    # Conservative per-call VMEM budget: double-buffered x/out tiles + resident
    # (double-buffered) weights + intermediate headroom.
    est = (2 * tile * input_dim * 4
           + 2 * out_dim * tile * 4
           + 2 * (w1.size + w2.size + w3.size) * 2
           + 2 * (b1.size + b2.size + b3.size) * 4
           + 4 * tile * max(h1p, h2p) * 4)
    vmem_limit = int(min(max(2 * est, 32 << 20), 48 << 20))

    flops = 2 * b * (input_dim * h1p + h1p * h2p + h2p * out_dim)
    bytes_accessed = (b * input_dim * 4 + b * out_dim * 4
                      + (w1.size + w2.size + w3.size) * 2
                      + (b1.size + b2.size + b3.size) * 4)

    resident = lambda shape: pl.BlockSpec(shape, lambda i: (0, 0))

    out_t = pl.pallas_call(
        mlp_kernel,
        out_shape=jax.ShapeDtypeStruct((out_dim, b), jnp.float32),
        grid=grid,
        in_specs=[
            pl.BlockSpec((tile, input_dim), lambda i: (i, 0)),   # streamed x tiles
            resident(w1.shape), resident(b1.shape),              # VMEM-resident weights
            resident(w2.shape), resident(b2.shape),
            resident(w3.shape), resident(b3.shape),
        ],
        out_specs=pl.BlockSpec((out_dim, tile), lambda i: (0, i)),  # lane-dense output
        compiler_params=pltpu.CompilerParams(
            dimension_semantics=("parallel",),                   # megacore on v7x
            vmem_limit_bytes=vmem_limit),
        cost_estimate=pl.CostEstimate(
            flops=int(flops), transcendentals=0, bytes_accessed=int(bytes_accessed)),
    )(x2d, w1, b1, w2, b2, w3, b3)
    return out_t.T                                               # (batch, out_dim)


def init_params(key, input_dim, layers=(64, 32), output_dim=1):
    """Deterministic PyTorch-style (uniform +/- 1/sqrt(fan_in)) init.
    Weights stored as (in, out) = transposed PyTorch layout, float32 (logical)."""
    dims = [input_dim] + list(layers) + [output_dim]
    params = []
    for i in range(len(dims) - 1):
        fan_in, fan_out = dims[i], dims[i + 1]
        key, kw, kb = jax.random.split(key, 3)
        bound = 1.0 / (fan_in ** 0.5)
        w = jax.random.uniform(kw, (fan_in, fan_out), jnp.float32, -bound, bound)
        bvec = jax.random.uniform(kb, (1, fan_out), jnp.float32, -bound, bound)
        params.extend([w, bvec])
    return tuple(params)


def pad_and_cast_params(params, lane=128):
    """Zero-pad hidden dims to lane width (64->128, 32->128), cast weights to
    bf16 (biases stay f32 for the f32 accumulators), and transpose the last
    bias to (out_dim, 1) for the transposed final layer. Zero padding leaves
    the forward pass mathematically unchanged (ReLU of 0 stays 0)."""
    w1, b1, w2, b2, w3, b3 = params
    d_in, h1 = w1.shape
    h2 = w2.shape[1]
    out_dim = w3.shape[1]
    h1p, h2p = _round_up(h1, lane), _round_up(h2, lane)

    w1p = jnp.zeros((d_in, h1p), jnp.float32).at[:, :h1].set(w1).astype(jnp.bfloat16)
    b1p = jnp.zeros((1, h1p), jnp.float32).at[:, :h1].set(b1)
    w2p = jnp.zeros((h1p, h2p), jnp.float32).at[:h1, :h2].set(w2).astype(jnp.bfloat16)
    b2p = jnp.zeros((1, h2p), jnp.float32).at[:, :h2].set(b2)
    w3p = jnp.zeros((h2p, out_dim), jnp.float32).at[:h2, :].set(w3).astype(jnp.bfloat16)
    b3p = b3.T.astype(jnp.float32)                           # (out_dim, 1)
    return (w1p, b1p, w2p, b2p, w3p, b3p)


if __name__ == "__main__":
    key = jax.random.PRNGKey(0)
    kx, kp = jax.random.split(key)

    batch, seq, feat = 2, 4, 8          # flattened input_dim = 32
    input_dim = seq * feat
    x = jax.random.normal(kx, (batch, seq, feat), jnp.float32)

    logical_params = init_params(kp, input_dim, layers=(64, 32), output_dim=1)
    kernel_params = pad_and_cast_params(logical_params)

    y = neural_network_forward(x, kernel_params)
    jax.block_until_ready(y)

    # Pure-JAX reference of the same (bf16 matmul inputs, f32 accumulation)
    # forward pass using the unpadded logical weights.
    w1, b1, w2, b2, w3, b3 = logical_params
    xf = x.reshape(batch, -1).astype(jnp.bfloat16)
    ref = jnp.dot(xf, w1.astype(jnp.bfloat16), preferred_element_type=jnp.float32) + b1
    ref = jnp.maximum(ref, 0.0).astype(jnp.bfloat16)
    ref = jnp.dot(ref, w2.astype(jnp.bfloat16), preferred_element_type=jnp.float32) + b2
    ref = jnp.maximum(ref, 0.0).astype(jnp.bfloat16)
    ref = jnp.dot(ref, w3.astype(jnp.bfloat16), preferred_element_type=jnp.float32) + b3

    assert y.shape == (batch, 1), y.shape
    assert jnp.allclose(y, ref, atol=2e-3, rtol=2e-3), (y, ref)

    print("KERNEL_OK")
</pallas_src>

<mosaic_0001>
module attributes {stable_mosaic.version = 11 : i64} {
  func.func @mlp_kernel(%arg0: i32, %arg1: memref<2x32xf32, #tpu.memory_space<vmem>>, %arg2: memref<32x128xbf16, #tpu.memory_space<vmem>>, %arg3: memref<1x128xf32, #tpu.memory_space<vmem>>, %arg4: memref<128x128xbf16, #tpu.memory_space<vmem>>, %arg5: memref<1x128xf32, #tpu.memory_space<vmem>>, %arg6: memref<128x1xbf16, #tpu.memory_space<vmem>>, %arg7: memref<1x1xf32, #tpu.memory_space<vmem>>, %arg8: memref<1x2xf32, #tpu.memory_space<vmem>>) attributes {dimension_semantics = [#tpu.dimension_semantics<parallel>], iteration_bounds = array<i64: 1>, scalar_prefetch = 0 : i64, scratch_operands = 0 : i64, tpu.core_type = #tpu.core_type<tc>, window_params = [{transform_indices = @transform_0, window_bounds = array<i64: 2, 32>}, {pipeline_mode = #tpu.pipeline_mode<synchronous>, transform_indices = @transform_1, window_bounds = array<i64: 32, 128>}, {pipeline_mode = #tpu.pipeline_mode<synchronous>, transform_indices = @transform_2, window_bounds = array<i64: 1, 128>}, {pipeline_mode = #tpu.pipeline_mode<synchronous>, transform_indices = @transform_3, window_bounds = array<i64: 128, 128>}, {pipeline_mode = #tpu.pipeline_mode<synchronous>, transform_indices = @transform_4, window_bounds = array<i64: 1, 128>}, {pipeline_mode = #tpu.pipeline_mode<synchronous>, transform_indices = @transform_5, window_bounds = array<i64: 128, 1>}, {pipeline_mode = #tpu.pipeline_mode<synchronous>, transform_indices = @transform_6, window_bounds = array<i64: 1, 1>}, {transform_indices = @transform_7, window_bounds = array<i64: 1, 2>}]} {
    %c0 = arith.constant 0 : index
    %c0_0 = arith.constant 0 : index
    %0 = vector.load %arg1[%c0, %c0_0] : memref<2x32xf32, #tpu.memory_space<vmem>>, vector<2x32xf32>
    %1 = arith.truncf %0 : vector<2x32xf32> to vector<2x32xbf16>
    %c0_1 = arith.constant 0 : index
    %c0_2 = arith.constant 0 : index
    %2 = vector.load %arg2[%c0_1, %c0_2] : memref<32x128xbf16, #tpu.memory_space<vmem>>, vector<32x128xbf16>
    %cst = arith.constant dense<0.000000e+00> : vector<2x128xf32>
    %3 = tpu.matmul %1, %2, %cst {dimension_numbers = #tpu.dot_dimension_numbers<[1], [0], [0], [1], [0, 0, 1, 1], [], []>} : vector<2x32xbf16>, vector<32x128xbf16>, vector<2x128xf32> -> vector<2x128xf32>
    %c0_3 = arith.constant 0 : index
    %c0_4 = arith.constant 0 : index
    %4 = vector.load %arg3[%c0_3, %c0_4] : memref<1x128xf32, #tpu.memory_space<vmem>>, vector<1x128xf32>
    %5 = vector.broadcast %4 : vector<1x128xf32> to vector<2x128xf32>
    %6 = arith.addf %3, %5 : vector<2x128xf32>
    %cst_5 = arith.constant 0.000000e+00 : f32
    %7 = vector.broadcast %cst_5 : f32 to vector<2x128xf32>
    %8 = arith.maximumf %6, %7 : vector<2x128xf32>
    %9 = arith.truncf %8 : vector<2x128xf32> to vector<2x128xbf16>
    %c0_6 = arith.constant 0 : index
    %c0_7 = arith.constant 0 : index
    %10 = vector.load %arg4[%c0_6, %c0_7] : memref<128x128xbf16, #tpu.memory_space<vmem>>, vector<128x128xbf16>
    %cst_8 = arith.constant dense<0.000000e+00> : vector<2x128xf32>
    %11 = tpu.matmul %9, %10, %cst_8 {dimension_numbers = #tpu.dot_dimension_numbers<[1], [0], [0], [1], [0, 0, 1, 1], [], []>} : vector<2x128xbf16>, vector<128x128xbf16>, vector<2x128xf32> -> vector<2x128xf32>
    %c0_9 = arith.constant 0 : index
    %c0_10 = arith.constant 0 : index
    %12 = vector.load %arg5[%c0_9, %c0_10] : memref<1x128xf32, #tpu.memory_space<vmem>>, vector<1x128xf32>
    %13 = vector.broadcast %12 : vector<1x128xf32> to vector<2x128xf32>
    %14 = arith.addf %11, %13 : vector<2x128xf32>
    %cst_11 = arith.constant 0.000000e+00 : f32
    %15 = vector.broadcast %cst_11 : f32 to vector<2x128xf32>
    %16 = arith.maximumf %14, %15 : vector<2x128xf32>
    %17 = arith.truncf %16 : vector<2x128xf32> to vector<2x128xbf16>
    %c0_12 = arith.constant 0 : index
    %c0_13 = arith.constant 0 : index
    %18 = vector.load %arg6[%c0_12, %c0_13] : memref<128x1xbf16, #tpu.memory_space<vmem>>, vector<128x1xbf16>
    %cst_14 = arith.constant dense<0.000000e+00> : vector<1x2xf32>
    %19 = tpu.matmul %18, %17, %cst_14 {dimension_numbers = #tpu.dot_dimension_numbers<[0], [1], [1], [0], [0, 1, 1, 0], [], []>} : vector<128x1xbf16>, vector<2x128xbf16>, vector<1x2xf32> -> vector<1x2xf32>
    %c0_15 = arith.constant 0 : index
    %c0_16 = arith.constant 0 : index
    %20 = vector.load %arg7[%c0_15, %c0_16] : memref<1x1xf32, #tpu.memory_space<vmem>>, vector<1x1xf32>
    %21 = vector.broadcast %20 : vector<1x1xf32> to vector<1x2xf32>
    %22 = arith.addf %19, %21 : vector<1x2xf32>
    %c0_17 = arith.constant 0 : index
    %c0_18 = arith.constant 0 : index
    %23 = vector.load %arg8[%c0_17, %c0_18] : memref<1x2xf32, #tpu.memory_space<vmem>>, vector<1x2xf32>
    tpu.vector_store %arg8[%c0_17, %c0_18], %22 {strides = array<i32>} : memref<1x2xf32, #tpu.memory_space<vmem>>, vector<1x2xf32>,
    return
  }
  func.func @transform_0(%arg0: i32) -> (i32, i32) {
    %c0_i32 = arith.constant 0 : i32
    %c0_i32_0 = arith.constant 0 : i32
    return %arg0, %c0_i32 : i32, i32
  }
  func.func @transform_1(%arg0: i32) -> (i32, i32) {
    %c0_i32 = arith.constant 0 : i32
    %c0_i32_0 = arith.constant 0 : i32
    %c0_i32_1 = arith.constant 0 : i32
    return %c0_i32, %c0_i32_0 : i32, i32
  }
  func.func @transform_2(%arg0: i32) -> (i32, i32) {
    %c0_i32 = arith.constant 0 : i32
    %c0_i32_0 = arith.constant 0 : i32
    %c0_i32_1 = arith.constant 0 : i32
    return %c0_i32, %c0_i32_0 : i32, i32
  }
  func.func @transform_3(%arg0: i32) -> (i32, i32) {
    %c0_i32 = arith.constant 0 : i32
    %c0_i32_0 = arith.constant 0 : i32
    %c0_i32_1 = arith.constant 0 : i32
    return %c0_i32, %c0_i32_0 : i32, i32
  }
  func.func @transform_4(%arg0: i32) -> (i32, i32) {
    %c0_i32 = arith.constant 0 : i32
    %c0_i32_0 = arith.constant 0 : i32
    %c0_i32_1 = arith.constant 0 : i32
    return %c0_i32, %c0_i32_0 : i32, i32
  }
  func.func @transform_5(%arg0: i32) -> (i32, i32) {
    %c0_i32 = arith.constant 0 : i32
    %c0_i32_0 = arith.constant 0 : i32
    %c0_i32_1 = arith.constant 0 : i32
    return %c0_i32, %c0_i32_0 : i32, i32
  }
  func.func @transform_6(%arg0: i32) -> (i32, i32) {
    %c0_i32 = arith.constant 0 : i32
    %c0_i32_0 = arith.constant 0 : i32
    %c0_i32_1 = arith.constant 0 : i32
    return %c0_i32, %c0_i32_0 : i32, i32
  }
  func.func @transform_7(%arg0: i32) -> (i32, i32) {
    %c0_i32 = arith.constant 0 : i32
    %c0_i32_0 = arith.constant 0 : i32
    return %c0_i32, %arg0 : i32, i32
  }
}

</mosaic_0001>

<bundles_post_ra>
// kernel: tpu_custom_call.1
= control target key start
LH: loop header
LB: loop body
LE: loop exit
PB: predicated region body
PF: predicated region fallthrough
CT: control target
= control target key end

     0   :  { %s698_s0 = inlined_call_operand.hbm [shape: f32[2,32], index: 0, kind: input, shape index: {}]   ;;  %s699_s1 = inlined_call_operand.vmem [shape: bf16[32,128], index: 1, kind: input, shape index: {}]   ;;  %s700_s2 = inlined_call_operand.hbm [shape: f32[1,128], index: 2, kind: input, shape index: {}]   ;;  %s701_s3 = inlined_call_operand.vmem [shape: bf16[128,128], index: 3, kind: input, shape index: {}]   ;;  %s702_s4 = inlined_call_operand.vmem [shape: f32[1,128], index: 4, kind: input, shape index: {}]   ;;  %s703_s5 = inlined_call_operand.vmem [shape: bf16[128,1], index: 5, kind: input, shape index: {}]   ;;  %s704_s6 = inlined_call_operand.<no memory space> [shape: f32[1,1], index: 6, kind: input, shape index: {}]   ;;  %s705_s7 = inlined_call_operand.hbm [shape: f32[1,2], index: 7, kind: output, shape index: {}]  }
   0x1   :  { %v12_v0 = vstv %s704_s6 }
   0x2   :  { %13 = vst [vmem:[#allocation2] sm:$0x1] %v12_v0 }
   0x3   :  { %14 = vsyncpa [#allocation4], 0 }
   0x4   :  { %15 = vsyncpa [#allocation7], 0 }
   0x5   :  { %16 = vsyncpa [#allocation5], 0  ;;  %s553_s26 = smov [#allocation3]   ;;  %s554_s28 = smov [#allocation6]  }
   0x6   :  { %s23_s27 = sshll.u32 %s553_s26, 4  ;;  %s35_s29 = sshll.u32 %s554_s28, 4  ;;  %s24_s27 = int_to_ptr.vmem [resolvable:$true] %s23_s27  ;;  %s36_s29 = int_to_ptr.vmem [resolvable:$true] %s35_s29 }
   0x7   :  { %s481_s9 = scalar_lea.hbm %s698_s0, 32 }
   0x8   :  { %p482_p0 = scmp.ne.s32.totalorder %s698_s0, %s481_s9  ;;  %p485_p1 = scmp.lt.u32.totalorder %s481_s9, %s698_s0 }
   0xa   :  { %p487_p2 = pnand %p485_p1, %p482_p0 }
   0xc   :  { %490 = shalt.err (!%p487_p2)
}
   0xd   :  { %s491_s13 = scalar_lea.vmem %s24_s27, 32  ;;  %p496_p4 = scmp.lt.s32.totalorder %s24_s27, %s24_s27 }
   0xe   :  { %p492_p3 = scmp.ne.s32.totalorder %s24_s27, %s491_s13  ;;  %p497_p5 = scmp.lt.s32.totalorder %s491_s13, %s491_s13 }
  0x10   :  { %p498_p6 = por %p497_p5, %p496_p4 }
  0x12   :  { %p499_p7 = pnand %p498_p6, %p492_p3 }
  0x14   :  { %502 = shalt.err (!%p499_p7)
}
  0x15   :  { %26 = dma.hbm_to_vmem [thread:$0]  %s698_s0, 32, %s24_s27, [#allocation4]  }
  0x16   :  { %s503_s18 = scalar_lea.hbm %s700_s2, 16 }
  0x17   :  { %p504_p8 = scmp.ne.s32.totalorder %s700_s2, %s503_s18  ;;  %p507_p9 = scmp.lt.u32.totalorder %s503_s18, %s700_s2 }
  0x19   :  { %p509_p10 = pnand %p507_p9, %p504_p8 }
  0x1b   :  { %512 = shalt.err (!%p509_p10)
}
  0x1c   :  { %s513_s23 = scalar_lea.vmem %s36_s29, 16  ;;  %s517_s24 = scalar_lea.vmem %s36_s29, 32 }
  0x1d   :  { %p514_p11 = scmp.ne.s32.totalorder %s36_s29, %s513_s23  ;;  %p518_p12 = scmp.lt.s32.totalorder %s36_s29, %s36_s29 }
  0x1e   :  { %p519_p13 = scmp.lt.s32.totalorder %s517_s24, %s513_s23 }
  0x20   :  { %p520_p0 = por %p519_p13, %p518_p12 }
  0x22   :  { %p521_p1 = pnand %p520_p0, %p514_p11 }
  0x24   :  { %524 = shalt.err (!%p521_p1)
}
  0x25   :  { %38 = dma.hbm_to_vmem [thread:$0]  %s700_s2, 16, %s36_s29, [#allocation7]  }
  0x26   :  { %547 = dma.done.wait [#allocation4], 32  }
  0x27   :  { %548 = vsyncadd [#allocation4], 4294967264 }
  0x28   :  { %549 = dma.done.wait [#allocation7], 16  }
  0x29   :  { %550 = vsyncadd [#allocation7], 4294967280  ;;  %v555_v1 = vmov 0.0   ;;  %vm556_vm0 = vmmov 0   ;;  %v463_v2 = vld [vmem:[%s699_s1] sm:$0xff]   ;;  %v464_v3 = vld [vmem:[%s699_s1 + $0x8] sm:$0xff]   ;;  %v260_v41 = vlaneseq }
  0x2a   :  { %421 = vmatprep.subr.bf16.mxu0 %v555_v1  ;;  %425 = vmatprep.mubr.msk.bf16.mxu0 %vm556_vm0, %v555_v1  ;;  %v54_v4 = vld [vmem:[#allocation3] sm:$0x3]  ;;  %v466_v7 = vld [vmem:[%s701_s3 + $0x8] sm:$0xff]   ;;  %vm79_vm1 = vcmask 261120   ;;  %v467_v8 = vld [vmem:[%s701_s3 + $0x10] sm:$0xff]   ;;  %v557_v31 = vmov 0  }
  0x2b   :  { %429 = vmatprep.subr.bf16.mxu1 %v555_v1  ;;  %445 = vmatprep.mubr.msk.bf16.mxu1 %vm556_vm0, %v555_v1  ;;  %v465_v5 = vld [vmem:[%s701_s3] sm:$0xff]   ;;  %v55_v6 = vpack.c.bf16 %v54_v4, %v54_v4  ;;  %v468_v9 = vld [vmem:[%s701_s3 + $0x18] sm:$0xff]   ;;  %v470_v11 = vld [vmem:[%s701_s3 + $0x28] sm:$0xff]   ;;  %v261_v42 = vshrl.u32 %v260_v41, 7  ;;  %vm368_vm2 = vcmask 8192  }
  0x2c   :  { %422 = vmatpush3.bf16.msra.mxu0 %v463_v2  ;;  %430 = vmatpush3.bf16.msra.mxu1 %v465_v5  ;;  %v469_v10 = vld [vmem:[%s701_s3 + $0x20] sm:$0xff]   ;;  %v471_v12 = vld [vmem:[%s701_s3 + $0x30] sm:$0xff]   ;;  %v472_v13 = vld [vmem:[%s701_s3 + $0x38] sm:$0xff]  }
  0x2d   :  { %423 = vmatprep.subr.bf16.mxu0 %v555_v1  ;;  %431 = vmatprep.subr.bf16.mxu1 %v555_v1  ;;  %v473_v14 = vld [vmem:[%s703_s5] sm:$0xff]   ;;  %v474_v15 = vld [vmem:[%s703_s5 + $0x8] sm:$0xff]   ;;  %v475_v16 = vld [vmem:[%s703_s5 + $0x10] sm:$0xff]   ;;  %v262_v43 = vsub.s32 0, %v261_v42 }
  0x2e   :  { %312 = vxpose.xlu0.c.b16.start [1/8] (narrow) %v473_v14, 16  ;;  %v476_v17 = vld [vmem:[%s703_s5 + $0x18] sm:$0xff]   ;;  %v477_v18 = vld [vmem:[%s703_s5 + $0x20] sm:$0xff]   ;;  %v478_v19 = vld [vmem:[%s703_s5 + $0x28] sm:$0xff]   ;;  %461 = vset.pattern.permute.xlu1 %v557_v31 }
  0x2f   :  { %v479_v20 = vld [vmem:[%s703_s5 + $0x30] sm:$0xff]   ;;  %v480_v21 = vld [vmem:[%s703_s5 + $0x38] sm:$0xff]   ;;  %v386_v22 = vld [vmem:[#allocation6] ss:$0 sm:$0xff]  ;;  %s558_s5 = smov [#allocation8]  }
  0x30   :  { %424 = vmatpush3.bf16.msra.mxu0 %v464_v3  ;;  %432 = vmatpush3.bf16.msra.mxu1 %v466_v7  ;;  %v254_v30 = vld [vmem:[#allocation2] sm:$0x1]  ;;  %s376_s1 = sshll.u32 %s558_s5, 4  ;;  %s377_s1 = int_to_ptr.vmem [resolvable:$true] %s376_s1 }
  0x31   :  { %449 = vmatprep.subr.bf16.mxu0 %v555_v1  ;;  %433 = vmatprep.subr.bf16.mxu1 %v555_v1  ;;  %v390_v32 = vld [vmem:[%s702_s4] ss:$0 sm:$0xff]  ;;  %s525_s4 = scalar_lea.vmem %s377_s1, 16  ;;  %s529_s12 = scalar_lea.vmem %s377_s1, 32 }
  0x32   :  { %313 = vxpose.xlu0.c.b16.cont [2/8] (narrow) %v474_v15, 16  ;;  %257 = vperm.xlu1 %461, %v254_v30   ;;  %p526_p2 = scmp.ne.s32.totalorder %s377_s1, %s525_s4  ;;  %p530_p3 = scmp.lt.s32.totalorder %s377_s1, %s377_s1 }
  0x33   :  { %426 = vmatmul.mubr.msk.bf16.vlgmr.msra.gmra.mrb[0].mxu0 %vm79_vm1, %v55_v6  ;;  %p531_p4 = scmp.lt.s32.totalorder %s529_s12, %s525_s4 }
  0x34   :  { %451 = vmatprep.mubr.msk.bf16.mxu0 %vm556_vm0, %v555_v1  ;;  %434 = vmatpush3.bf16.msra.mxu1 %v467_v8 }
  0x35   :  { %435 = vmatprep.subr.bf16.mxu1 %v555_v1  ;;  %p532_p5 = por %p531_p4, %p530_p3 }
  0x36   :  { %314 = vxpose.xlu0.c.b16.cont [3/8] (narrow) %v475_v16, 16 }
  0x37   :  { %p533_p6 = pnand %p532_p5, %p526_p2 }
  0x38   :  { %436 = vmatpush3.bf16.msra.mxu1 %v468_v9 }
  0x39   :  { %437 = vmatprep.subr.bf16.mxu1 %v555_v1 }
  0x3a   :  { %315 = vxpose.xlu0.c.b16.cont [4/8] (narrow) %v476_v17, 16 }
  0x3c   :  { %438 = vmatpush3.bf16.msra.mxu1 %v469_v10 }
  0x3d   :  { %439 = vmatprep.subr.bf16.mxu1 %v555_v1 }
  0x3e   :  { %316 = vxpose.xlu0.c.b16.cont [5/8] (narrow) %v477_v18, 16 }
  0x40   :  { %440 = vmatpush3.bf16.msra.mxu1 %v470_v11 }
  0x41   :  { %441 = vmatprep.subr.bf16.mxu1 %v555_v1 }
  0x42   :  { %317 = vxpose.xlu0.c.b16.cont [6/8] (narrow) %v478_v19, 16 }
  0x44   :  { %442 = vmatpush3.bf16.msra.mxu1 %v471_v12 }
  0x45   :  { %443 = vmatprep.subr.bf16.mxu1 %v555_v1 }
  0x46   :  { %318 = vxpose.xlu0.c.b16.cont [7/8] (narrow) %v479_v20, 16 }
  0x48   :  { %444 = vmatpush3.bf16.msra.mxu1 %v472_v13 }
  0x4a   :  { %319 = vxpose.xlu0.c.b16.end [8/8] (narrow) %v480_v21, 16 }
  0x53   :  { %462 = vset.pattern.permute.xlu0 %v557_v31 }
  0x94   :  { %v320_v40 = vpop.trf.xlu0 }
  0xb1   :  { %v258_v44 = vpop.permute.xlu1 %257 }
  0xb2   :  { %v263_v45 = vrot.slane %v258_v44, %v262_v43 }
 0x106   :  { %v117_v23 = vpop.f32.mrb[0].mxu0 }
 0x107   :  { %v118_v24 = vadd.f32 %v386_v22, %v117_v23  ;;  %v427_v25 = vpop.f32.mrb[1].mxu0 }
 0x108   :  { %v120_v26 = vpop.f32.mrb[2].mxu0 }
 0x109   :  { %v123_v27 = vmax.f32 %v118_v24, 0.0  ;;  %v428_v28 = vpop.f32.mrb[3].mxu0 }
 0x10b   :  { %v124_v29 = vpack.c.bf16 %v123_v27, %v123_v27 }
 0x10d   :  { %446 = vmatmul.mubr.bf16.vlgmr.msra.gmra.mrb[0].mxu1 %v124_v29 }
 0x1e0   :  { %v230_v33 = vpop.f32.mrb[0].mxu1 }
 0x1e1   :  { %v231_v34 = vadd.f32 %v390_v32, %v230_v33  ;;  %v447_v35 = vpop.f32.mrb[1].mxu1 }
 0x1e2   :  { %v233_v36 = vpop.f32.mrb[2].mxu1 }
 0x1e3   :  { %v236_v37 = vmax.f32 %v231_v34, 0.0  ;;  %v448_v38 = vpop.f32.mrb[3].mxu1 }
 0x1e5   :  { %v237_v39 = vpack.c.bf16 %v236_v37, %v236_v37 }
 0x1e7   :  { %450 = vmatpush3.bf16.xpose.msra.mxu0 %v237_v39 }
 0x1ee   :  { %452 = vmatmul.mubr.bf16.vlgmr.msra.gmra.mrb[4].mxu0 %v320_v40 }
 0x2c1   :  { %v362_v46 = vpop.f32.mrb[4].mxu0 }
 0x2c2   :  { %v363_v47 = vadd.f32 %v362_v46, %v263_v45  ;;  %v453_v48 = vpop.f32.mrb[5].mxu0 }
 0x2c3   :  { %v365_v49 = vpop.f32.mrb[6].mxu0 }
 0x2c4   :  { %v454_v50 = vpop.f32.mrb[7].mxu0  ;;  %369 = vst.msk [vmem:[#allocation8] sm:$0x1] %vm368_vm2, %v363_v47 }
 0x2c5   :  { %536 = shalt.err (!%p533_p6)
}
 0x2c6   :  { %s537_s14 = scalar_lea.hbm %s705_s7, 16 }
 0x2c7   :  { %p538_p7 = scmp.ne.s32.totalorder %s705_s7, %s537_s14  ;;  %p541_p8 = scmp.lt.u32.totalorder %s537_s14, %s705_s7 }
 0x2c9   :  { %p543_p9 = pnand %p541_p8, %p538_p7 }
 0x2cb   :  { %546 = shalt.err (!%p543_p9)
}
 0x2cc   :  { %379 = dma.vmem_to_hbm [thread:$0]  %s377_s1, 16, %s705_s7, [#allocation5]  }
 0x2cd   :  { %551 = dma.done.wait [#allocation5], 16  }
 0x2ce   :  { %552 = vsyncadd [#allocation5], 4294967280 }
 0x2cf   :  { %383 = vsyncpa [#allocation4], 1 }
 0x2d0   :  { %384 = vsyncpa [#allocation7], 1 }
 0x2d1   :  { %385 = vsyncpa [#allocation5], 1 }

</bundles_post_ra>
